<compile_context>
chip_gen: v5e
topology: v5e:2x2
jax: 0.10.0
libtpu: 0.0.40
codegen_flags: <defaults>
</compile_context>

<pallas_src>
import jax
import jax.numpy as jnp
from jax.experimental import pallas as pl
from jax.experimental.pallas import tpu as pltpu


def _conv_stats_kernel(xp_ref, b_ref, sum_ref, ssq_ref):
    # xp_ref  : (Nb, H+2, (W+2)*Cin) zero-padded, lane-flat rows of Nb images
    # b_ref   : (3, (W+2)*Cin, W*Cout) block-Toeplitz fused depthwise*pointwise weight
    # sum_ref : (8, W*Cout) per-split BN sum accumulator (sublane-folded partial)
    # ssq_ref : (8, W*Cout) per-split BN sum-of-squares accumulator
    nb, hp, _ = xp_ref.shape
    h = hp - 2
    wc = b_ref.shape[-1]

    # init per-split accumulators on the first step of the inner ("arbitrary") axis
    @pl.when(pl.program_id(1) == 0)
    def _():
        sum_ref[...] = jnp.zeros_like(sum_ref)
        ssq_ref[...] = jnp.zeros_like(ssq_ref)

    s_acc = jnp.zeros((8, wc), jnp.float32)
    q_acc = jnp.zeros((8, wc), jnp.float32)
    for i in range(nb):                                    # small static unroll
        xp = xp_ref[i]                                     # (H+2, (W+2)*Cin)
        # conv = 3 lane-dense MXU matmuls (one per dy row offset); no im2col, no relayout
        y = jnp.dot(xp[0:h, :], b_ref[0], preferred_element_type=jnp.float32)
        y += jnp.dot(xp[1:1 + h, :], b_ref[1], preferred_element_type=jnp.float32)
        y += jnp.dot(xp[2:2 + h, :], b_ref[2], preferred_element_type=jnp.float32)
        # fold H into (H/8, 8) sublane groups and reduce: stays lane-dense
        if h % 8 != 0:                                     # not hit for H=16 (static branch)
            y = jnp.pad(y, ((0, 8 - h % 8), (0, 0)))
        s_acc += y.reshape(-1, 8, wc).sum(axis=0)
        q_acc += (y * y).reshape(-1, 8, wc).sum(axis=0)
    sum_ref[...] += s_acc
    ssq_ref[...] += q_acc


def _conv_bn_relu_kernel(xp_ref, b_ref, scale_ref, shift_ref, o_ref):
    # Pass 2: recompute the conv (cheap) and apply folded BN (FMA) + ReLU, lane-dense store.
    nb, hp, _ = xp_ref.shape
    h = hp - 2
    scale = scale_ref[...]                                 # (1, W*Cout) per-lane
    shift = shift_ref[...]
    for i in range(nb):
        xp = xp_ref[i]
        y = jnp.dot(xp[0:h, :], b_ref[0], preferred_element_type=jnp.float32)
        y += jnp.dot(xp[1:1 + h, :], b_ref[1], preferred_element_type=jnp.float32)
        y += jnp.dot(xp[2:2 + h, :], b_ref[2], preferred_element_type=jnp.float32)
        o_ref[i] = jnp.maximum(y * scale + shift, 0.0)     # full 128-lane stores


def _fused_toeplitz_weight(w_dw, w_pw, W):
    """B[dy][(w+dx)*Cin+ci, w*Cout+co] = w_dw[ci,0,dy,dx]*w_pw[co,ci]; shape (3,(W+2)*Cin,W*Cout)."""
    Cin = w_dw.shape[0]
    wdw = w_dw[:, 0, :, :].astype(jnp.float32)             # (Cin, 3, 3)   [ci, dy, dx]
    wpw = w_pw[:, :, 0, 0].astype(jnp.float32)             # (Cout, Cin)   [co, ci]
    f = jnp.einsum('cyx,oc->yxco', wdw, wpw)               # (3, 3, Cin, Cout)
    r = jnp.arange(W + 2)[:, None]                         # padded-W row position
    w = jnp.arange(W)[None, :]                             # output column position
    d = r - w
    valid = (d >= 0) & (d <= 2)
    t = jnp.where(valid[None, :, :, None, None], f[:, jnp.clip(d, 0, 2)], 0.0)  # (3,W+2,W,Cin,Cout)
    return jnp.transpose(t, (0, 1, 3, 2, 4)).reshape(3, (W + 2) * Cin, W * (w_pw.shape[0]))


@jax.jit
def depthwise_separable_conv(x_nchw, w_dw, w_pw, gamma, beta):
    """x_nchw: (N, Cin, H, W); w_dw: (Cin, 1, 3, 3); w_pw: (Cout, Cin, 1, 1)."""
    N, Cin, H, W = x_nchw.shape
    Cout = w_pw.shape[0]
    eps = 1e-5
    WC = W * Cout                                          # lane-dense output width (=128 here)
    WpC = (W + 2) * Cin                                    # lane-flat padded input width

    # NCHW -> NHWC -> 1px zero pad -> flatten (W+2, Cin) into one lane axis; fuses into the
    # single mandatory layout copy under jit.
    x = jnp.transpose(x_nchw, (0, 2, 3, 1)).astype(jnp.float32)
    xp = jnp.pad(x, ((0, 0), (1, 1), (1, 1), (0, 0))).reshape(N, H + 2, WpC)

    b = _fused_toeplitz_weight(w_dw, w_pw, W)              # (3, WpC, WC), ~108 KiB f32

    # --- block sizing: Nb images per grid step, targeting >= ~0.5 MiB per block ---
    # TODO(synk): for very large H, additionally band-tile H with a 2-row halo.
    per_img = (H * WC + (H + 2) * WpC) * 4
    nb = 1
    for cand in range(1, N + 1):
        if N % cand == 0 and cand * per_img <= 4 * 1024 * 1024:
            nb = cand
            if cand * per_img >= 512 * 1024:
                break
    steps = N // nb
    # split the batch-step axis for v7x megacore when it divides evenly; each split keeps its
    # own BN-stat partial rows, so the "parallel" outer axis is race-free (1 split -> no-op).
    nsplit = 2 if steps % 2 == 0 else 1
    inner = steps // nsplit

    # ---- pass 1: conv (recomputed later) + BN sum / sum-of-squares only (no y round trip) ----
    s, q = pl.pallas_call(
        _conv_stats_kernel,
        out_shape=(
            jax.ShapeDtypeStruct((nsplit * 8, WC), jnp.float32),
            jax.ShapeDtypeStruct((nsplit * 8, WC), jnp.float32),
        ),
        grid=(nsplit, inner),
        in_specs=[
            pl.BlockSpec((nb, H + 2, WpC), lambda c, n: (c * inner + n, 0, 0)),
            pl.BlockSpec((3, WpC, WC), lambda c, n: (0, 0, 0)),
        ],
        out_specs=(
            pl.BlockSpec((8, WC), lambda c, n: (c, 0)),    # per-split accumulator rows
            pl.BlockSpec((8, WC), lambda c, n: (c, 0)),
        ),
        compiler_params=pltpu.CompilerParams(
            dimension_semantics=("parallel", "arbitrary")),
    )(xp, b)

    # ---- BN finalize (tiny glue): fold gamma/beta/mean/var into per-lane scale & shift ----
    cnt = jnp.float32(N * H * W)
    s_c = s.reshape(-1, W, Cout).sum(axis=(0, 1))
    q_c = q.reshape(-1, W, Cout).sum(axis=(0, 1))
    mean = s_c / cnt
    var = jnp.maximum(q_c / cnt - mean * mean, 0.0)        # clamp: never rsqrt(negative)
    scale = gamma.astype(jnp.float32) * jax.lax.rsqrt(var + eps)
    shift = beta.astype(jnp.float32) - mean * scale
    scale_l = jnp.tile(scale, W).reshape(1, WC)            # lane index = w*Cout + co
    shift_l = jnp.tile(shift, W).reshape(1, WC)

    # ---- pass 2: recompute conv + BN FMA + ReLU ("parallel" -> megacore-shardable) ----
    out = pl.pallas_call(
        _conv_bn_relu_kernel,
        out_shape=jax.ShapeDtypeStruct((N, H, WC), jnp.float32),
        grid=(steps,),
        in_specs=[
            pl.BlockSpec((nb, H + 2, WpC), lambda n: (n, 0, 0)),
            pl.BlockSpec((3, WpC, WC), lambda n: (0, 0, 0)),
            pl.BlockSpec((1, WC), lambda n: (0, 0)),
            pl.BlockSpec((1, WC), lambda n: (0, 0)),
        ],
        out_specs=pl.BlockSpec((nb, H, WC), lambda n: (n, 0, 0)),
        compiler_params=pltpu.CompilerParams(
            dimension_semantics=("parallel",)),
    )(xp, b, scale_l, shift_l)

    # (N, H, W*Cout) -> (N, H, W, Cout) -> NCHW (fused under jit)
    return jnp.transpose(out.reshape(N, H, W, Cout), (0, 3, 1, 2))


def _reference(x_nchw, w_dw, w_pw, gamma, beta):
    """Pure-JAX reference matching the PyTorch forward (training-mode BN)."""
    dw = jax.lax.conv_general_dilated(
        x_nchw, w_dw, window_strides=(1, 1), padding=((1, 1), (1, 1)),
        feature_group_count=x_nchw.shape[1],
        dimension_numbers=("NCHW", "OIHW", "NCHW"))
    pw = jax.lax.conv_general_dilated(
        dw, w_pw, window_strides=(1, 1), padding=((0, 0), (0, 0)),
        dimension_numbers=("NCHW", "OIHW", "NCHW"))
    mean = pw.mean(axis=(0, 2, 3), keepdims=True)
    var = jnp.square(pw - mean).mean(axis=(0, 2, 3), keepdims=True)
    y = (pw - mean) * jax.lax.rsqrt(var + 1e-5)
    y = y * gamma.reshape(1, -1, 1, 1) + beta.reshape(1, -1, 1, 1)
    return jnp.maximum(y, 0.0)


if __name__ == "__main__":
    # Small deterministic setup: N=2, Cin=4, H=W=16, Cout=8, stride=1.
    N, Cin, H, W, Cout = 2, 4, 16, 16, 8
    key = jax.random.PRNGKey(0)
    kx, kdw, kpw = jax.random.split(key, 3)

    x = jax.random.normal(kx, (N, Cin, H, W), dtype=jnp.float32)
    w_dw = jax.random.normal(kdw, (Cin, 1, 3, 3), dtype=jnp.float32) * 0.2
    w_pw = jax.random.normal(kpw, (Cout, Cin, 1, 1), dtype=jnp.float32) * 0.2
    gamma = jnp.ones((Cout,), jnp.float32)   # nn.BatchNorm2d default init
    beta = jnp.zeros((Cout,), jnp.float32)

    out = depthwise_separable_conv(x, w_dw, w_pw, gamma, beta)
    out = jax.block_until_ready(out)

    ref = _reference(x, w_dw, w_pw, gamma, beta)
    assert out.shape == (N, Cout, H, W)
    assert jnp.allclose(out, ref, atol=5e-4, rtol=5e-4), (
        f"max abs err = {jnp.max(jnp.abs(out - ref))}")

    print("KERNEL_OK")
</pallas_src>

<mosaic_0001>
module attributes {stable_mosaic.version = 11 : i64} {
  func.func @_conv_stats_kernel(%arg0: i32, %arg1: i32, %arg2: memref<2x18x72xf32, #tpu.memory_space<vmem>>, %arg3: memref<3x72x128xf32, #tpu.memory_space<vmem>>, %arg4: memref<8x128xf32, #tpu.memory_space<vmem>>, %arg5: memref<8x128xf32, #tpu.memory_space<vmem>>) attributes {dimension_semantics = [#tpu.dimension_semantics<parallel>, #tpu.dimension_semantics<arbitrary>], iteration_bounds = array<i64: 1, 1>, scalar_prefetch = 0 : i64, scratch_operands = 0 : i64, tpu.core_type = #tpu.core_type<tc>, window_params = [{transform_indices = @transform_0, window_bounds = array<i64: 2, 18, 72>}, {pipeline_mode = #tpu.pipeline_mode<synchronous>, transform_indices = @transform_1, window_bounds = array<i64: 3, 72, 128>}, {transform_indices = @transform_2, window_bounds = array<i64: 8, 128>}, {transform_indices = @transform_3, window_bounds = array<i64: 8, 128>}]} {
    %c0_i32 = arith.constant 0 : i32
    %0 = arith.cmpi eq, %arg1, %c0_i32 : i32
    %1 = arith.extui %0 : i1 to i32
    %c0_i32_0 = arith.constant 0 : i32
    %2 = arith.cmpi ne, %1, %c0_i32_0 : i32
    scf.if %2 {
      %cst_41 = arith.constant 0.000000e+00 : f32
      %57 = vector.broadcast %cst_41 : f32 to vector<8x128xf32>
      %c0_42 = arith.constant 0 : index
      %c0_43 = arith.constant 0 : index
      %58 = vector.load %arg4[%c0_42, %c0_43] : memref<8x128xf32, #tpu.memory_space<vmem>>, vector<8x128xf32>
      tpu.vector_store %arg4[%c0_42, %c0_43], %57 {strides = array<i32>} : memref<8x128xf32, #tpu.memory_space<vmem>>, vector<8x128xf32>,
      %cst_44 = arith.constant 0.000000e+00 : f32
      %59 = vector.broadcast %cst_44 : f32 to vector<8x128xf32>
      %c0_45 = arith.constant 0 : index
      %c0_46 = arith.constant 0 : index
      %60 = vector.load %arg5[%c0_45, %c0_46] : memref<8x128xf32, #tpu.memory_space<vmem>>, vector<8x128xf32>
      tpu.vector_store %arg5[%c0_45, %c0_46], %59 {strides = array<i32>} : memref<8x128xf32, #tpu.memory_space<vmem>>, vector<8x128xf32>,
    } else {
    }
    %cst = arith.constant 0.000000e+00 : f32
    %3 = vector.broadcast %cst : f32 to vector<8x128xf32>
    %cst_1 = arith.constant 0.000000e+00 : f32
    %4 = vector.broadcast %cst_1 : f32 to vector<8x128xf32>
    %c0 = arith.constant 0 : index
    %c0_2 = arith.constant 0 : index
    %c0_3 = arith.constant 0 : index
    %5 = vector.load %arg2[%c0, %c0_2, %c0_3] : memref<2x18x72xf32, #tpu.memory_space<vmem>>, vector<1x18x72xf32>
    %6 = vector.shape_cast %5 : vector<1x18x72xf32> to vector<18x72xf32>
    %7 = vector.extract_strided_slice %6 {offsets = [0, 0], sizes = [16, 72], strides = [1, 1]} : vector<18x72xf32> to vector<16x72xf32>
    %c0_4 = arith.constant 0 : index
    %c0_5 = arith.constant 0 : index
    %c0_6 = arith.constant 0 : index
    %8 = vector.load %arg3[%c0_4, %c0_5, %c0_6] : memref<3x72x128xf32, #tpu.memory_space<vmem>>, vector<1x72x128xf32>
    %9 = vector.shape_cast %8 : vector<1x72x128xf32> to vector<72x128xf32>
    %cst_7 = arith.constant dense<0.000000e+00> : vector<16x128xf32>
    %10 = tpu.matmul %7, %9, %cst_7 {dimension_numbers = #tpu.dot_dimension_numbers<[1], [0], [0], [1], [0, 0, 1, 1], [], []>} : vector<16x72xf32>, vector<72x128xf32>, vector<16x128xf32> -> vector<16x128xf32>
    %11 = vector.extract_strided_slice %6 {offsets = [1, 0], sizes = [16, 72], strides = [1, 1]} : vector<18x72xf32> to vector<16x72xf32>
    %c1 = arith.constant 1 : index
    %c0_8 = arith.constant 0 : index
    %c0_9 = arith.constant 0 : index
    %12 = vector.load %arg3[%c1, %c0_8, %c0_9] : memref<3x72x128xf32, #tpu.memory_space<vmem>>, vector<1x72x128xf32>
    %13 = vector.shape_cast %12 : vector<1x72x128xf32> to vector<72x128xf32>
    %cst_10 = arith.constant dense<0.000000e+00> : vector<16x128xf32>
    %14 = tpu.matmul %11, %13, %cst_10 {dimension_numbers = #tpu.dot_dimension_numbers<[1], [0], [0], [1], [0, 0, 1, 1], [], []>} : vector<16x72xf32>, vector<72x128xf32>, vector<16x128xf32> -> vector<16x128xf32>
    %15 = arith.addf %10, %14 : vector<16x128xf32>
    %16 = vector.extract_strided_slice %6 {offsets = [2, 0], sizes = [16, 72], strides = [1, 1]} : vector<18x72xf32> to vector<16x72xf32>
    %c2 = arith.constant 2 : index
    %c0_11 = arith.constant 0 : index
    %c0_12 = arith.constant 0 : index
    %17 = vector.load %arg3[%c2, %c0_11, %c0_12] : memref<3x72x128xf32, #tpu.memory_space<vmem>>, vector<1x72x128xf32>
    %18 = vector.shape_cast %17 : vector<1x72x128xf32> to vector<72x128xf32>
    %cst_13 = arith.constant dense<0.000000e+00> : vector<16x128xf32>
    %19 = tpu.matmul %16, %18, %cst_13 {dimension_numbers = #tpu.dot_dimension_numbers<[1], [0], [0], [1], [0, 0, 1, 1], [], []>} : vector<16x72xf32>, vector<72x128xf32>, vector<16x128xf32> -> vector<16x128xf32>
    %20 = arith.addf %15, %19 : vector<16x128xf32>
    %21 = vector.shape_cast %20 : vector<16x128xf32> to vector<2x8x128xf32>
    %cst_14 = arith.constant dense<0.000000e+00> : vector<8x128xf32>
    %22 = vector.multi_reduction <add>, %21, %cst_14 [0] : vector<2x8x128xf32> to vector<8x128xf32>
    %23 = arith.addf %3, %22 : vector<8x128xf32>
    %24 = arith.mulf %20, %20 : vector<16x128xf32>
    %25 = vector.shape_cast %24 : vector<16x128xf32> to vector<2x8x128xf32>
    %cst_15 = arith.constant dense<0.000000e+00> : vector<8x128xf32>
    %26 = vector.multi_reduction <add>, %25, %cst_15 [0] : vector<2x8x128xf32> to vector<8x128xf32>
    %27 = arith.addf %4, %26 : vector<8x128xf32>
    %c1_16 = arith.constant 1 : index
    %c0_17 = arith.constant 0 : index
    %c0_18 = arith.constant 0 : index
    %28 = vector.load %arg2[%c1_16, %c0_17, %c0_18] : memref<2x18x72xf32, #tpu.memory_space<vmem>>, vector<1x18x72xf32>
    %29 = vector.shape_cast %28 : vector<1x18x72xf32> to vector<18x72xf32>
    %30 = vector.extract_strided_slice %29 {offsets = [0, 0], sizes = [16, 72], strides = [1, 1]} : vector<18x72xf32> to vector<16x72xf32>
    %c0_19 = arith.constant 0 : index
    %c0_20 = arith.constant 0 : index
    %c0_21 = arith.constant 0 : index
    %31 = vector.load %arg3[%c0_19, %c0_20, %c0_21] : memref<3x72x128xf32, #tpu.memory_space<vmem>>, vector<1x72x128xf32>
    %32 = vector.shape_cast %31 : vector<1x72x128xf32> to vector<72x128xf32>
    %cst_22 = arith.constant dense<0.000000e+00> : vector<16x128xf32>
    %33 = tpu.matmul %30, %32, %cst_22 {dimension_numbers = #tpu.dot_dimension_numbers<[1], [0], [0], [1], [0, 0, 1, 1], [], []>} : vector<16x72xf32>, vector<72x128xf32>, vector<16x128xf32> -> vector<16x128xf32>
    %34 = vector.extract_strided_slice %29 {offsets = [1, 0], sizes = [16, 72], strides = [1, 1]} : vector<18x72xf32> to vector<16x72xf32>
    %c1_23 = arith.constant 1 : index
    %c0_24 = arith.constant 0 : index
    %c0_25 = arith.constant 0 : index
    %35 = vector.load %arg3[%c1_23, %c0_24, %c0_25] : memref<3x72x128xf32, #tpu.memory_space<vmem>>, vector<1x72x128xf32>
    %36 = vector.shape_cast %35 : vector<1x72x128xf32> to vector<72x128xf32>
    %cst_26 = arith.constant dense<0.000000e+00> : vector<16x128xf32>
    %37 = tpu.matmul %34, %36, %cst_26 {dimension_numbers = #tpu.dot_dimension_numbers<[1], [0], [0], [1], [0, 0, 1, 1], [], []>} : vector<16x72xf32>, vector<72x128xf32>, vector<16x128xf32> -> vector<16x128xf32>
    %38 = arith.addf %33, %37 : vector<16x128xf32>
    %39 = vector.extract_strided_slice %29 {offsets = [2, 0], sizes = [16, 72], strides = [1, 1]} : vector<18x72xf32> to vector<16x72xf32>
    %c2_27 = arith.constant 2 : index
    %c0_28 = arith.constant 0 : index
    %c0_29 = arith.constant 0 : index
    %40 = vector.load %arg3[%c2_27, %c0_28, %c0_29] : memref<3x72x128xf32, #tpu.memory_space<vmem>>, vector<1x72x128xf32>
    %41 = vector.shape_cast %40 : vector<1x72x128xf32> to vector<72x128xf32>
    %cst_30 = arith.constant dense<0.000000e+00> : vector<16x128xf32>
    %42 = tpu.matmul %39, %41, %cst_30 {dimension_numbers = #tpu.dot_dimension_numbers<[1], [0], [0], [1], [0, 0, 1, 1], [], []>} : vector<16x72xf32>, vector<72x128xf32>, vector<16x128xf32> -> vector<16x128xf32>
    %43 = arith.addf %38, %42 : vector<16x128xf32>
    %44 = vector.shape_cast %43 : vector<16x128xf32> to vector<2x8x128xf32>
    %cst_31 = arith.constant dense<0.000000e+00> : vector<8x128xf32>
    %45 = vector.multi_reduction <add>, %44, %cst_31 [0] : vector<2x8x128xf32> to vector<8x128xf32>
    %46 = arith.addf %23, %45 : vector<8x128xf32>
    %47 = arith.mulf %43, %43 : vector<16x128xf32>
    %48 = vector.shape_cast %47 : vector<16x128xf32> to vector<2x8x128xf32>
    %cst_32 = arith.constant dense<0.000000e+00> : vector<8x128xf32>
    %49 = vector.multi_reduction <add>, %48, %cst_32 [0] : vector<2x8x128xf32> to vector<8x128xf32>
    %50 = arith.addf %27, %49 : vector<8x128xf32>
    %c0_33 = arith.constant 0 : index
    %c0_34 = arith.constant 0 : index
    %51 = vector.load %arg4[%c0_33, %c0_34] : memref<8x128xf32, #tpu.memory_space<vmem>>, vector<8x128xf32>
    %52 = arith.addf %51, %46 : vector<8x128xf32>
    %c0_35 = arith.constant 0 : index
    %c0_36 = arith.constant 0 : index
    %53 = vector.load %arg4[%c0_35, %c0_36] : memref<8x128xf32, #tpu.memory_space<vmem>>, vector<8x128xf32>
    tpu.vector_store %arg4[%c0_35, %c0_36], %52 {strides = array<i32>} : memref<8x128xf32, #tpu.memory_space<vmem>>, vector<8x128xf32>,
    %c0_37 = arith.constant 0 : index
    %c0_38 = arith.constant 0 : index
    %54 = vector.load %arg5[%c0_37, %c0_38] : memref<8x128xf32, #tpu.memory_space<vmem>>, vector<8x128xf32>
    %55 = arith.addf %54, %50 : vector<8x128xf32>
    %c0_39 = arith.constant 0 : index
    %c0_40 = arith.constant 0 : index
    %56 = vector.load %arg5[%c0_39, %c0_40] : memref<8x128xf32, #tpu.memory_space<vmem>>, vector<8x128xf32>
    tpu.vector_store %arg5[%c0_39, %c0_40], %55 {strides = array<i32>} : memref<8x128xf32, #tpu.memory_space<vmem>>, vector<8x128xf32>,
    return
  }
  func.func @transform_0(%arg0: i32, %arg1: i32) -> (i32, i32, i32) {
    %c1_i32 = arith.constant 1 : i32
    %0 = arith.muli %arg0, %c1_i32 : i32
    %1 = arith.addi %0, %arg1 : i32
    %c0_i32 = arith.constant 0 : i32
    %c0_i32_0 = arith.constant 0 : i32
    %c0_i32_1 = arith.constant 0 : i32
    return %1, %c0_i32, %c0_i32_0 : i32, i32, i32
  }
  func.func @transform_1(%arg0: i32, %arg1: i32) -> (i32, i32, i32) {
    %c0_i32 = arith.constant 0 : i32
    %c0_i32_0 = arith.constant 0 : i32
    %c0_i32_1 = arith.constant 0 : i32
    %c0_i32_2 = arith.constant 0 : i32
    return %c0_i32, %c0_i32_0, %c0_i32_1 : i32, i32, i32
  }
  func.func @transform_2(%arg0: i32, %arg1: i32) -> (i32, i32) {
    %c0_i32 = arith.constant 0 : i32
    %c0_i32_0 = arith.constant 0 : i32
    return %arg0, %c0_i32 : i32, i32
  }
  func.func @transform_3(%arg0: i32, %arg1: i32) -> (i32, i32) {
    %c0_i32 = arith.constant 0 : i32
    %c0_i32_0 = arith.constant 0 : i32
    return %arg0, %c0_i32 : i32, i32
  }
}

module attributes {stable_mosaic.version = 11 : i64} {
  func.func @_conv_bn_relu_kernel(%arg0: i32, %arg1: memref<2x18x72xf32, #tpu.memory_space<vmem>>, %arg2: memref<3x72x128xf32, #tpu.memory_space<vmem>>, %arg3: memref<1x128xf32, #tpu.memory_space<vmem>>, %arg4: memref<1x128xf32, #tpu.memory_space<vmem>>, %arg5: memref<2x16x128xf32, #tpu.memory_space<vmem>>) attributes {dimension_semantics = [#tpu.dimension_semantics<parallel>], iteration_bounds = array<i64: 1>, scalar_prefetch = 0 : i64, scratch_operands = 0 : i64, tpu.core_type = #tpu.core_type<tc>, window_params = [{transform_indices = @transform_0, window_bounds = array<i64: 2, 18, 72>}, {pipeline_mode = #tpu.pipeline_mode<synchronous>, transform_indices = @transform_1, window_bounds = array<i64: 3, 72, 128>}, {pipeline_mode = #tpu.pipeline_mode<synchronous>, transform_indices = @transform_2, window_bounds = array<i64: 1, 128>}, {pipeline_mode = #tpu.pipeline_mode<synchronous>, transform_indices = @transform_3, window_bounds = array<i64: 1, 128>}, {transform_indices = @transform_4, window_bounds = array<i64: 2, 16, 128>}]} {
    %c0 = arith.constant 0 : index
    %c0_0 = arith.constant 0 : index
    %0 = vector.load %arg3[%c0, %c0_0] : memref<1x128xf32, #tpu.memory_space<vmem>>, vector<1x128xf32>
    %c0_1 = arith.constant 0 : index
    %c0_2 = arith.constant 0 : index
    %1 = vector.load %arg4[%c0_1, %c0_2] : memref<1x128xf32, #tpu.memory_space<vmem>>, vector<1x128xf32>
    %c0_3 = arith.constant 0 : index
    %c0_4 = arith.constant 0 : index
    %c0_5 = arith.constant 0 : index
    %2 = vector.load %arg1[%c0_3, %c0_4, %c0_5] : memref<2x18x72xf32, #tpu.memory_space<vmem>>, vector<1x18x72xf32>
    %3 = vector.shape_cast %2 : vector<1x18x72xf32> to vector<18x72xf32>
    %4 = vector.extract_strided_slice %3 {offsets = [0, 0], sizes = [16, 72], strides = [1, 1]} : vector<18x72xf32> to vector<16x72xf32>
    %c0_6 = arith.constant 0 : index
    %c0_7 = arith.constant 0 : index
    %c0_8 = arith.constant 0 : index
    %5 = vector.load %arg2[%c0_6, %c0_7, %c0_8] : memref<3x72x128xf32, #tpu.memory_space<vmem>>, vector<1x72x128xf32>
    %6 = vector.shape_cast %5 : vector<1x72x128xf32> to vector<72x128xf32>
    %cst = arith.constant dense<0.000000e+00> : vector<16x128xf32>
    %7 = tpu.matmul %4, %6, %cst {dimension_numbers = #tpu.dot_dimension_numbers<[1], [0], [0], [1], [0, 0, 1, 1], [], []>} : vector<16x72xf32>, vector<72x128xf32>, vector<16x128xf32> -> vector<16x128xf32>
    %8 = vector.extract_strided_slice %3 {offsets = [1, 0], sizes = [16, 72], strides = [1, 1]} : vector<18x72xf32> to vector<16x72xf32>
    %c1 = arith.constant 1 : index
    %c0_9 = arith.constant 0 : index
    %c0_10 = arith.constant 0 : index
    %9 = vector.load %arg2[%c1, %c0_9, %c0_10] : memref<3x72x128xf32, #tpu.memory_space<vmem>>, vector<1x72x128xf32>
    %10 = vector.shape_cast %9 : vector<1x72x128xf32> to vector<72x128xf32>
    %cst_11 = arith.constant dense<0.000000e+00> : vector<16x128xf32>
    %11 = tpu.matmul %8, %10, %cst_11 {dimension_numbers = #tpu.dot_dimension_numbers<[1], [0], [0], [1], [0, 0, 1, 1], [], []>} : vector<16x72xf32>, vector<72x128xf32>, vector<16x128xf32> -> vector<16x128xf32>
    %12 = arith.addf %7, %11 : vector<16x128xf32>
    %13 = vector.extract_strided_slice %3 {offsets = [2, 0], sizes = [16, 72], strides = [1, 1]} : vector<18x72xf32> to vector<16x72xf32>
    %c2 = arith.constant 2 : index
    %c0_12 = arith.constant 0 : index
    %c0_13 = arith.constant 0 : index
    %14 = vector.load %arg2[%c2, %c0_12, %c0_13] : memref<3x72x128xf32, #tpu.memory_space<vmem>>, vector<1x72x128xf32>
    %15 = vector.shape_cast %14 : vector<1x72x128xf32> to vector<72x128xf32>
    %cst_14 = arith.constant dense<0.000000e+00> : vector<16x128xf32>
    %16 = tpu.matmul %13, %15, %cst_14 {dimension_numbers = #tpu.dot_dimension_numbers<[1], [0], [0], [1], [0, 0, 1, 1], [], []>} : vector<16x72xf32>, vector<72x128xf32>, vector<16x128xf32> -> vector<16x128xf32>
    %17 = arith.addf %12, %16 : vector<16x128xf32>
    %18 = vector.broadcast %0 : vector<1x128xf32> to vector<16x128xf32>
    %19 = arith.mulf %17, %18 : vector<16x128xf32>
    %20 = vector.broadcast %1 : vector<1x128xf32> to vector<16x128xf32>
    %21 = arith.addf %19, %20 : vector<16x128xf32>
    %cst_15 = arith.constant 0.000000e+00 : f32
    %22 = vector.broadcast %cst_15 : f32 to vector<16x128xf32>
    %23 = arith.maximumf %21, %22 : vector<16x128xf32>
    %c0_16 = arith.constant 0 : index
    %c0_17 = arith.constant 0 : index
    %c0_18 = arith.constant 0 : index
    %24 = vector.load %arg5[%c0_16, %c0_17, %c0_18] : memref<2x16x128xf32, #tpu.memory_space<vmem>>, vector<1x16x128xf32>
    %25 = vector.shape_cast %24 : vector<1x16x128xf32> to vector<16x128xf32>
    %26 = vector.shape_cast %23 : vector<16x128xf32> to vector<1x16x128xf32>
    tpu.vector_store %arg5[%c0_16, %c0_17, %c0_18], %26 {strides = array<i32>} : memref<2x16x128xf32, #tpu.memory_space<vmem>>, vector<1x16x128xf32>,
    %c1_19 = arith.constant 1 : index
    %c0_20 = arith.constant 0 : index
    %c0_21 = arith.constant 0 : index
    %27 = vector.load %arg1[%c1_19, %c0_20, %c0_21] : memref<2x18x72xf32, #tpu.memory_space<vmem>>, vector<1x18x72xf32>
    %28 = vector.shape_cast %27 : vector<1x18x72xf32> to vector<18x72xf32>
    %29 = vector.extract_strided_slice %28 {offsets = [0, 0], sizes = [16, 72], strides = [1, 1]} : vector<18x72xf32> to vector<16x72xf32>
    %c0_22 = arith.constant 0 : index
    %c0_23 = arith.constant 0 : index
    %c0_24 = arith.constant 0 : index
    %30 = vector.load %arg2[%c0_22, %c0_23, %c0_24] : memref<3x72x128xf32, #tpu.memory_space<vmem>>, vector<1x72x128xf32>
    %31 = vector.shape_cast %30 : vector<1x72x128xf32> to vector<72x128xf32>
    %cst_25 = arith.constant dense<0.000000e+00> : vector<16x128xf32>
    %32 = tpu.matmul %29, %31, %cst_25 {dimension_numbers = #tpu.dot_dimension_numbers<[1], [0], [0], [1], [0, 0, 1, 1], [], []>} : vector<16x72xf32>, vector<72x128xf32>, vector<16x128xf32> -> vector<16x128xf32>
    %33 = vector.extract_strided_slice %28 {offsets = [1, 0], sizes = [16, 72], strides = [1, 1]} : vector<18x72xf32> to vector<16x72xf32>
    %c1_26 = arith.constant 1 : index
    %c0_27 = arith.constant 0 : index
    %c0_28 = arith.constant 0 : index
    %34 = vector.load %arg2[%c1_26, %c0_27, %c0_28] : memref<3x72x128xf32, #tpu.memory_space<vmem>>, vector<1x72x128xf32>
    %35 = vector.shape_cast %34 : vector<1x72x128xf32> to vector<72x128xf32>
    %cst_29 = arith.constant dense<0.000000e+00> : vector<16x128xf32>
    %36 = tpu.matmul %33, %35, %cst_29 {dimension_numbers = #tpu.dot_dimension_numbers<[1], [0], [0], [1], [0, 0, 1, 1], [], []>} : vector<16x72xf32>, vector<72x128xf32>, vector<16x128xf32> -> vector<16x128xf32>
    %37 = arith.addf %32, %36 : vector<16x128xf32>
    %38 = vector.extract_strided_slice %28 {offsets = [2, 0], sizes = [16, 72], strides = [1, 1]} : vector<18x72xf32> to vector<16x72xf32>
    %c2_30 = arith.constant 2 : index
    %c0_31 = arith.constant 0 : index
    %c0_32 = arith.constant 0 : index
    %39 = vector.load %arg2[%c2_30, %c0_31, %c0_32] : memref<3x72x128xf32, #tpu.memory_space<vmem>>, vector<1x72x128xf32>
    %40 = vector.shape_cast %39 : vector<1x72x128xf32> to vector<72x128xf32>
    %cst_33 = arith.constant dense<0.000000e+00> : vector<16x128xf32>
    %41 = tpu.matmul %38, %40, %cst_33 {dimension_numbers = #tpu.dot_dimension_numbers<[1], [0], [0], [1], [0, 0, 1, 1], [], []>} : vector<16x72xf32>, vector<72x128xf32>, vector<16x128xf32> -> vector<16x128xf32>
    %42 = arith.addf %37, %41 : vector<16x128xf32>
    %43 = vector.broadcast %0 : vector<1x128xf32> to vector<16x128xf32>
    %44 = arith.mulf %42, %43 : vector<16x128xf32>
    %45 = vector.broadcast %1 : vector<1x128xf32> to vector<16x128xf32>
    %46 = arith.addf %44, %45 : vector<16x128xf32>
    %cst_34 = arith.constant 0.000000e+00 : f32
    %47 = vector.broadcast %cst_34 : f32 to vector<16x128xf32>
    %48 = arith.maximumf %46, %47 : vector<16x128xf32>
    %c1_35 = arith.constant 1 : index
    %c0_36 = arith.constant 0 : index
    %c0_37 = arith.constant 0 : index
    %49 = vector.load %arg5[%c1_35, %c0_36, %c0_37] : memref<2x16x128xf32, #tpu.memory_space<vmem>>, vector<1x16x128xf32>
    %50 = vector.shape_cast %49 : vector<1x16x128xf32> to vector<16x128xf32>
    %51 = vector.shape_cast %48 : vector<16x128xf32> to vector<1x16x128xf32>
    tpu.vector_store %arg5[%c1_35, %c0_36, %c0_37], %51 {strides = array<i32>} : memref<2x16x128xf32, #tpu.memory_space<vmem>>, vector<1x16x128xf32>,
    return
  }
  func.func @transform_0(%arg0: i32) -> (i32, i32, i32) {
    %c0_i32 = arith.constant 0 : i32
    %c0_i32_0 = arith.constant 0 : i32
    %c0_i32_1 = arith.constant 0 : i32
    return %arg0, %c0_i32, %c0_i32_0 : i32, i32, i32
  }
  func.func @transform_1(%arg0: i32) -> (i32, i32, i32) {
    %c0_i32 = arith.constant 0 : i32
    %c0_i32_0 = arith.constant 0 : i32
    %c0_i32_1 = arith.constant 0 : i32
    %c0_i32_2 = arith.constant 0 : i32
    return %c0_i32, %c0_i32_0, %c0_i32_1 : i32, i32, i32
  }
  func.func @transform_2(%arg0: i32) -> (i32, i32) {
    %c0_i32 = arith.constant 0 : i32
    %c0_i32_0 = arith.constant 0 : i32
    %c0_i32_1 = arith.constant 0 : i32
    return %c0_i32, %c0_i32_0 : i32, i32
  }
  func.func @transform_3(%arg0: i32) -> (i32, i32) {
    %c0_i32 = arith.constant 0 : i32
    %c0_i32_0 = arith.constant 0 : i32
    %c0_i32_1 = arith.constant 0 : i32
    return %c0_i32, %c0_i32_0 : i32, i32
  }
  func.func @transform_4(%arg0: i32) -> (i32, i32, i32) {
    %c0_i32 = arith.constant 0 : i32
    %c0_i32_0 = arith.constant 0 : i32
    %c0_i32_1 = arith.constant 0 : i32
    return %arg0, %c0_i32, %c0_i32_0 : i32, i32, i32
  }
}

</mosaic_0001>

<bundles_post_ra>
// kernel: tile.13
= control target key start
LH: loop header
LB: loop body
LE: loop exit
PB: predicated region body
PF: predicated region fallthrough
CT: control target
= control target key end

     0   :  { %s28_s0 = inlined_call_operand.vmem [shape: f32[8], index: 0, kind: input, shape index: {}]   ;;  %s29_s1 = inlined_call_operand.vmem [shape: f32[16,8], index: 1, kind: output, shape index: {}]  }
   0x1   :  { %v4_v0 = vld [vmem:[%s28_s0] ss:$0 sm:$0xff] }
   0x2   :  { %5 = vst [vmem:[%s29_s1] sm:$0xff] %v4_v0 }
   0x3   :  { %8 = vst [vmem:[%s29_s1 + $0x8] sm:$0xff] %v4_v0 }

// kernel: tile.14
= control target key start
LH: loop header
LB: loop body
LE: loop exit
PB: predicated region body
PF: predicated region fallthrough
CT: control target
= control target key end

     0   :  { %s131_s10 = smov 120   ;;  %s132_s11 = smov 104   ;;  %vm3_vm0 = vcmask 64512   ;;  %vm9_vm1 = vcmask 1048512   ;;  %vm15_vm2 = vcmask 982912   ;;  %vm21_vm3 = vcmask 917312   ;;  %s207_s0 = inlined_call_operand.vmem [shape: f32[16,8], index: 0, kind: input, shape index: {}]   ;;  %s208_s1 = inlined_call_operand.vmem [shape: f32[1,128], index: 1, kind: output, shape index: {}]  }
   0x1   :  { %v101_v0 = vld [vmem:[%s207_s0 + $0xf] sm:$0x1]   ;;  %v103_v1 = vld [vmem:[%s207_s0 + $0xd] sm:$0x1]   ;;  %v105_v2 = vld [vmem:[%s207_s0 + $0xb] sm:$0x1]  }
   0x2   :  { %7 = vrot.lane.b32.xlu0 %v101_v0, %s131_s10  ;;  %19 = vrot.lane.b32.xlu1 %v103_v1, %s132_s11  ;;  %s133_s14 = smov 88   ;;  %v102_v3 = vld [vmem:[%s207_s0 + $0xe] sm:$0x1]   ;;  %v104_v4 = vld [vmem:[%s207_s0 + $0xc] sm:$0x1]   ;;  %s134_s19 = smov 112  }
   0x3   :  { %31 = vrot.lane.b32.xlu2 %v105_v2, %s133_s14  ;;  %s135_s20 = smov 96   ;;  %v106_v5 = vld [vmem:[%s207_s0 + $0xa] sm:$0x1]   ;;  %s136_s23 = smov 80   ;;  %v107_v6 = vld [vmem:[%s207_s0 + $0x9] sm:$0x1]  }
   0x4   :  { %v108_v7 = vld [vmem:[%s207_s0 + $0x8] sm:$0x1]   ;;  %s137_s28 = smov 72   ;;  %s138_s29 = smov 64   ;;  %v109_v8 = vld [vmem:[%s207_s0 + $0x7] sm:$0x1]  }
   0x5   :  { %s139_s3 = smov 56   ;;  %v110_v9 = vld [vmem:[%s207_s0 + $0x6] sm:$0x1]   ;;  %v111_v10 = vld [vmem:[%s207_s0 + $0x5] sm:$0x1]   ;;  %s140_s8 = smov 48  }
   0x6   :  { %s141_s9 = smov 40   ;;  %v112_v11 = vld [vmem:[%s207_s0 + $0x4] sm:$0x1]   ;;  %s142_s12 = smov 32   ;;  %v113_v12 = vld [vmem:[%s207_s0 + $0x3] sm:$0x1]  }
   0x7   :  { %v114_v13 = vld [vmem:[%s207_s0 + $0x2] sm:$0x1]   ;;  %s143_s17 = smov 24   ;;  %s144_s18 = smov 16   ;;  %v115_v14 = vld [vmem:[%s207_s0 + $0x1] sm:$0x1]  }
   0x8   :  { %s145_s21 = smov 8   ;;  %v2_v15 = vld [vmem:[%s207_s0] sm:$0x1]   ;;  %vm27_vm4 = vcmask 851712   ;;  %vm33_vm5 = vcmask 786112   ;;  %vm39_vm6 = vcmask 720512  }
   0x9   :  { %4 = vst.msk [vmem:[#allocation0] sm:$0x1] %vm3_vm0, %v2_v15   ;;  %vm45_vm7 = vcmask 654912   ;;  %vm51_vm8 = vcmask 589312   ;;  %vm57_vm9 = vcmask 523712   ;;  %vm63_vm10 = vcmask 458112  }
   0xa   :  { %13 = vrot.lane.b32.xlu0 %v102_v3, %s134_s19  ;;  %25 = vrot.lane.b32.xlu1 %v104_v4, %s135_s20  ;;  %vm69_vm11 = vcmask 392512   ;;  %vm75_vm12 = vcmask 326912   ;;  %vm81_vm13 = vcmask 261312   ;;  %vm87_vm14 = vcmask 195712  }
   0xb   :  { %37 = vrot.lane.b32.xlu2 %v106_v5, %s136_s23  ;;  %vm93_vm15 = vcmask 130112  }
  0x12   :  { %43 = vrot.lane.b32.xlu0 %v107_v6, %s137_s28  ;;  %49 = vrot.lane.b32.xlu1 %v108_v7, %s138_s29 }
  0x13   :  { %55 = vrot.lane.b32.xlu2 %v109_v8, %s139_s3 }
  0x1a   :  { %61 = vrot.lane.b32.xlu0 %v110_v9, %s140_s8  ;;  %67 = vrot.lane.b32.xlu1 %v111_v10, %s141_s9 }
  0x1b   :  { %73 = vrot.lane.b32.xlu2 %v112_v11, %s142_s12 }
  0x22   :  { %79 = vrot.lane.b32.xlu0 %v113_v12, %s143_s17  ;;  %85 = vrot.lane.b32.xlu1 %v114_v13, %s144_s18 }
  0x23   :  { %91 = vrot.lane.b32.xlu2 %v115_v14, %s145_s21 }
  0x5d   :  { %v32_v16 = vpop.permute.xlu2 %31  }
  0x65   :  { %v38_v17 = vpop.permute.xlu2 %37  }
  0x6d   :  { %v56_v18 = vpop.permute.xlu2 %55  }
  0x74   :  { %v8_v19 = vpop.permute.xlu0 %7   ;;  %v20_v20 = vpop.permute.xlu1 %19  }
  0x75   :  { %10 = vst.msk [vmem:[#allocation0] sm:$0x1] %vm9_vm1, %v8_v19   ;;  %v74_v21 = vpop.permute.xlu2 %73  }
  0x7c   :  { %v14_v22 = vpop.permute.xlu0 %13   ;;  %v26_v23 = vpop.permute.xlu1 %25  }
  0x7d   :  { %16 = vst.msk [vmem:[#allocation0] sm:$0x1] %vm15_vm2, %v14_v22   ;;  %v92_v24 = vpop.permute.xlu2 %91  }
  0x7e   :  { %22 = vst.msk [vmem:[#allocation0] sm:$0x1] %vm21_vm3, %v20_v20  }
  0x7f   :  { %28 = vst.msk [vmem:[#allocation0] sm:$0x1] %vm27_vm4, %v26_v23  }
  0x80   :  { %34 = vst.msk [vmem:[#allocation0] sm:$0x1] %vm33_vm5, %v32_v16  }
  0x81   :  { %40 = vst.msk [vmem:[#allocation0] sm:$0x1] %vm39_vm6, %v38_v17  }
  0x84   :  { %v44_v25 = vpop.permute.xlu0 %43   ;;  %v50_v26 = vpop.permute.xlu1 %49  }
  0x85   :  { %46 = vst.msk [vmem:[#allocation0] sm:$0x1] %vm45_vm7, %v44_v25  }
  0x86   :  { %52 = vst.msk [vmem:[#allocation0] sm:$0x1] %vm51_vm8, %v50_v26  }
  0x87   :  { %58 = vst.msk [vmem:[#allocation0] sm:$0x1] %vm57_vm9, %v56_v18  }
  0x8c   :  { %v62_v27 = vpop.permute.xlu0 %61   ;;  %v68_v28 = vpop.permute.xlu1 %67  }
  0x8d   :  { %64 = vst.msk [vmem:[#allocation0] sm:$0x1] %vm63_vm10, %v62_v27  }
  0x8e   :  { %70 = vst.msk [vmem:[#allocation0] sm:$0x1] %vm69_vm11, %v68_v28  }
  0x8f   :  { %76 = vst.msk [vmem:[#allocation0] sm:$0x1] %vm75_vm12, %v74_v21  }
  0x94   :  { %v80_v29 = vpop.permute.xlu0 %79   ;;  %v86_v30 = vpop.permute.xlu1 %85  }
  0x95   :  { %82 = vst.msk [vmem:[#allocation0] sm:$0x1] %vm81_vm13, %v80_v29  }
  0x96   :  { %88 = vst.msk [vmem:[#allocation0] sm:$0x1] %vm87_vm14, %v86_v30  }
  0x97   :  { %94 = vst.msk [vmem:[#allocation0] sm:$0x1] %vm93_vm15, %v92_v24  }
  0x9e   :  { %v97_v31 = vld [vmem:[#allocation0] sm:$0x1] }
  0x9f   :  { %100 = vst [vmem:[%s208_s1] sm:$0x1] %v97_v31 }

// kernel: depthwise_separable_conv.2
= control target key start
LH: loop header
LB: loop body
LE: loop exit
PB: predicated region body
PF: predicated region fallthrough
CT: control target
= control target key end

     0   :  { %vm140_vm0 = vcmask 1045504   ;;  %vm69_vm1 = vcmask 1046528   ;;  %vm75_vm2 = vcmask 588800   ;;  %s604_s1 = inlined_call_operand.vmem [shape: f32[3,72,128], index: 1, kind: input, shape index: {}]   ;;  %s605_s0 = inlined_call_operand.vmem [shape: f32[2,18,72], index: 0, kind: input, shape index: {}]   ;;  %s606_s2 = inlined_call_operand.vmem [shape: f32[8,128], index: 2, kind: output, shape index: {0}]   ;;  %s607_s3 = inlined_call_operand.vmem [shape: f32[8,128], index: 3, kind: output, shape index: {1}]  }
   0x1   :  { %v315_v0 = vld [vmem:[%s604_s1 + $0x88] sm:$0xff]  ;;  %v385_v1 = vld [vmem:[%s604_s1 + $0xd0] sm:$0xff]  ;;  %v314_v2 = vld [vmem:[%s604_s1 + $0x80] sm:$0xff] }
   0x2   :  { %87 = vmatpush.msra.mxu0 %v315_v0  ;;  %157 = vmatpush.msra.mxu2 %v385_v1  ;;  %v394_v3 = vld [vmem:[%s604_s1 + $0x40] sm:$0xff]  ;;  %v399_v4 = vld [vmem:[%s604_s1 + $0xc8] sm:$0xff]  ;;  %v313_v5 = vld [vmem:[%s604_s1 + $0x78] sm:$0xff] }
   0x3   :  { %114 = vmatpush.msra.mxu1 %v394_v3  ;;  %204 = vmatpush.msra.mxu3 %v315_v0  ;;  %v408_v6 = vld [vmem:[%s604_s1 + $0x38] sm:$0xff]  ;;  %v413_v7 = vld [vmem:[%s604_s1 + $0xc0] sm:$0xff]  ;;  %v419_v8 = vld [vmem:[%s604_s1 + $0x30] sm:$0xff] }
   0x4   :  { %88 = vmatpush.msra.mxu0 %v314_v2  ;;  %158 = vmatpush.msra.mxu2 %v399_v4  ;;  %v312_v9 = vld [vmem:[%s604_s1 + $0x70] sm:$0xff]  ;;  %v428_v10 = vld [vmem:[%s604_s1 + $0xb8] sm:$0xff]  ;;  %v434_v11 = vld [vmem:[%s604_s1 + $0x28] sm:$0xff] }
   0x5   :  { %115 = vmatpush.msra.mxu1 %v408_v6  ;;  %205 = vmatpush.msra.mxu3 %v314_v2  ;;  %v311_v12 = vld [vmem:[%s604_s1 + $0x68] sm:$0xff]  ;;  %v443_v13 = vld [vmem:[%s604_s1 + $0xb0] sm:$0xff]  ;;  %v449_v14 = vld [vmem:[%s604_s1 + $0x20] sm:$0xff] }
   0x6   :  { %89 = vmatpush.msra.mxu0 %v313_v5  ;;  %159 = vmatpush.msra.mxu2 %v413_v7  ;;  %v310_v15 = vld [vmem:[%s604_s1 + $0x60] sm:$0xff]  ;;  %v458_v16 = vld [vmem:[%s604_s1 + $0xa8] sm:$0xff]  ;;  %v467_v18 = vld [vmem:[%s604_s1 + $0x18] sm:$0xff] }
   0x7   :  { %116 = vmatpush.msra.mxu1 %v419_v8  ;;  %206 = vmatpush.msra.mxu3 %v313_v5  ;;  %v44_v17 = vld [vmem:[%s605_s0] sm:$0xff]  ;;  %v472_v19 = vld [vmem:[%s605_s0 + $0x8] sm:$0xff]  ;;  %v309_v20 = vld [vmem:[%s604_s1 + $0x58] sm:$0xff] }
   0x8   :  { %90 = vmatpush.msra.mxu0 %v312_v9  ;;  %160 = vmatpush.msra.mxu2 %v428_v10  ;;  %v481_v21 = vld [vmem:[%s604_s1 + $0xa0] sm:$0xff]  ;;  %v487_v22 = vld [vmem:[%s604_s1 + $0x10] sm:$0xff]  ;;  %v141_v23 = vrot.slane %v44_v17, 2  ;;  %v142_v24 = vrot.slane %v472_v19, 2  ;;  %v497_v26 = vld [vmem:[%s604_s1 + $0x98] sm:$0xff]  ;;  %v70_v27 = vrot.slane %v44_v17, 1 }
   0x9   :  { %117 = vmatpush.msra.mxu1 %v434_v11  ;;  %207 = vmatpush.msra.mxu3 %v312_v9  ;;  %v308_v25 = vld [vmem:[%s604_s1 + $0x50] sm:$0xff]  ;;  %v71_v28 = vrot.slane %v472_v19, 1  ;;  %v504_v29 = vld [vmem:[%s604_s1 + $0x8] sm:$0xff]  ;;  %v509_v30 = vld [vmem:[%s605_s0 + $0x18] sm:$0xff] }
   0xa   :  { %91 = vmatpush.msra.mxu0 %v311_v12  ;;  %161 = vmatpush.msra.mxu2 %v443_v13  ;;  %v514_v31 = vld [vmem:[%s605_s0 + $0x20] sm:$0xff]  ;;  %v307_v32 = vld [vmem:[%s604_s1 + $0x48] sm:$0xff]  ;;  %v523_v33 = vld [vmem:[%s604_s1 + $0x90] sm:$0xff]  ;;  %v143_v34 = vsel %vm140_vm0, %v141_v23, %v142_v24  ;;  %v188_v36 = vrot.slane %v509_v30, 1  ;;  %v247_v48 = vrot.slane %v509_v30, 2 }
   0xb   :  { %118 = vmatpush.msra.mxu1 %v449_v14  ;;  %208 = vmatpush.msra.mxu3 %v311_v12  ;;  %v72_v35 = vsel %vm69_vm1, %v70_v27, %v71_v28  ;;  %v189_v37 = vrot.slane %v514_v31, 1  ;;  %v47_v38 = vld [vmem:[%s604_s1] sm:$0xff]  ;;  %v46_v39 = vld [vmem:[%s605_s0 + $0x10] sm:$0x3]  ;;  %v333_v43 = vld [vmem:[%s605_s0 + $0x28] sm:$0x3] }
   0xc   :  { %92 = vmatpush.msra.mxu0 %v310_v15  ;;  %162 = vmatpush.msra.mxu2 %v458_v16  ;;  %v144_v41 = vrot.slane %v46_v39, 2  ;;  %v73_v42 = vrot.slane %v46_v39, 1  ;;  %v191_v45 = vrot.slane %v333_v43, 1  ;;  %v248_v49 = vrot.slane %v514_v31, 2 }
   0xd   :  { %119 = vmatpush.msra.mxu1 %v467_v18  ;;  %209 = vmatpush.msra.mxu3 %v310_v15  ;;  %v190_v40 = vsel %vm69_vm1, %v188_v36, %v189_v37  ;;  %v250_v50 = vrot.slane %v333_v43, 2 }
   0xe   :  { %93 = vmatpush.msra.mxu0 %v309_v20  ;;  %163 = vmatpush.msra.mxu2 %v481_v21  ;;  %v145_v44 = vsel %vm140_vm0, %v142_v24, %v144_v41  ;;  %v74_v46 = vsel %vm69_vm1, %v71_v28, %v73_v42  ;;  %v192_v47 = vsel %vm69_vm1, %v189_v37, %v191_v45 }
   0xf   :  { %120 = vmatpush.msra.mxu1 %v487_v22  ;;  %210 = vmatpush.msra.mxu3 %v309_v20  ;;  %v249_v51 = vsel %vm140_vm0, %v247_v48, %v248_v49  ;;  %v251_v52 = vsel %vm140_vm0, %v248_v49, %v250_v50 }
  0x10   :  { %94 = vmatpush.msra.mxu0 %v308_v25  ;;  %164 = vmatpush.msra.mxu2 %v497_v26 }
  0x11   :  { %121 = vmatpush.msra.mxu1 %v504_v29  ;;  %211 = vmatpush.msra.mxu3 %v308_v25 }
  0x12   :  { %95 = vmatpush.msra.mxu0 %v307_v32  ;;  %165 = vmatpush.msra.mxu2 %v523_v33 }
  0x13   :  { %329 = vmatmul.msk.f32.vlgmr.msra.gmra.mxu2 %vm75_vm2, %v143_v34  ;;  %316 = vmatmul.msk.f32.vlgmr.msra.gmra.mxu0 %vm75_vm2, %v72_v35 }
  0x14   :  { %231 = vmatpush.msrb.mxu0 %v394_v3  ;;  %340 = vmatpush.msrb.mxu2 %v394_v3 }
  0x15   :  { %122 = vmatpush.msra.mxu1 %v47_v38  ;;  %212 = vmatpush.msra.mxu3 %v307_v32 }
  0x16   :  { %232 = vmatpush.msrb.mxu0 %v408_v6  ;;  %341 = vmatpush.msrb.mxu2 %v408_v6 }
  0x17   :  { %263 = vmatpush.msrb.mxu1 %v385_v1  ;;  %349 = vmatpush.msrb.mxu3 %v385_v1 }
  0x18   :  { %318 = vmatmul.msk.f32.vlgmr.msra.gmra.mxu1 %vm75_vm2, %v44_v17  ;;  %334 = vmatmul.msk.f32.vlgmr.msra.gmra.mxu3 %vm75_vm2, %v190_v40 }
  0x19   :  { %233 = vmatpush.msrb.mxu0 %v419_v8  ;;  %342 = vmatpush.msrb.mxu2 %v419_v8 }
  0x1a   :  { %264 = vmatpush.msrb.mxu1 %v399_v4  ;;  %350 = vmatpush.msrb.mxu3 %v399_v4 }
  0x1b   :  { %234 = vmatpush.msrb.mxu0 %v434_v11  ;;  %343 = vmatpush.msrb.mxu2 %v434_v11 }
  0x1c   :  { %265 = vmatpush.msrb.mxu1 %v413_v7  ;;  %351 = vmatpush.msrb.mxu3 %v413_v7 }
  0x1d   :  { %330 = vmatmul.msk.f32.gmra.mxu2 %vm75_vm2, %v145_v44  ;;  %235 = vmatpush.msrb.mxu0 %v449_v14 }
  0x1e   :  { %344 = vmatpush.msrb.mxu2 %v449_v14  ;;  %266 = vmatpush.msrb.mxu1 %v428_v10 }
  0x1f   :  { %352 = vmatpush.msrb.mxu3 %v428_v10  ;;  %317 = vmatmul.msk.f32.gmra.mxu0 %vm75_vm2, %v74_v46 }
  0x20   :  { %236 = vmatpush.msrb.mxu0 %v467_v18  ;;  %345 = vmatpush.msrb.mxu2 %v467_v18 }
  0x21   :  { %267 = vmatpush.msrb.mxu1 %v443_v13  ;;  %353 = vmatpush.msrb.mxu3 %v443_v13 }
  0x22   :  { %319 = vmatmul.msk.f32.gmra.mxu1 %vm75_vm2, %v472_v19  ;;  %335 = vmatmul.msk.f32.gmra.mxu3 %vm75_vm2, %v192_v47 }
  0x23   :  { %237 = vmatpush.msrb.mxu0 %v487_v22  ;;  %346 = vmatpush.msrb.mxu2 %v487_v22 }
  0x24   :  { %268 = vmatpush.msrb.mxu1 %v458_v16  ;;  %354 = vmatpush.msrb.mxu3 %v458_v16 }
  0x25   :  { %238 = vmatpush.msrb.mxu0 %v504_v29  ;;  %347 = vmatpush.msrb.mxu2 %v504_v29 }
  0x26   :  { %269 = vmatpush.msrb.mxu1 %v481_v21  ;;  %355 = vmatpush.msrb.mxu3 %v481_v21 }
  0x27   :  { %239 = vmatpush.msrb.mxu0 %v47_v38  ;;  %348 = vmatpush.msrb.mxu2 %v47_v38 }
  0x28   :  { %270 = vmatpush.msrb.mxu1 %v497_v26  ;;  %356 = vmatpush.msrb.mxu3 %v497_v26 }
  0x29   :  { %336 = vmatmul.msk.f32.vlgmr.msrb.gmra.mxu0 %vm75_vm2, %v509_v30  ;;  %337 = vmatmul.msk.f32.vlgmr.msrb.gmra.mxu2 %vm75_vm2, %v514_v31 }
  0x2a   :  { %271 = vmatpush.msrb.mxu1 %v523_v33  ;;  %357 = vmatpush.msrb.mxu3 %v523_v33 }
  0x2b   :  { %338 = vmatmul.msk.f32.vlgmr.msrb.gmra.mxu1 %vm75_vm2, %v249_v51  ;;  %339 = vmatmul.msk.f32.vlgmr.msrb.gmra.mxu3 %vm75_vm2, %v251_v52 }
  0x90   :  { %v97_v53 = vpop.f32.mrf.mxu0 }
  0x95   :  { %v124_v54 = vpop.f32.mrf.mxu1 }
  0x96   :  { %v167_v55 = vpop.f32.mrf.mxu2  ;;  %v125_v63 = vadd.f32 %v124_v54, %v97_v53 }
  0x98   :  { %v173_v3 = vadd.f32 %v167_v55, %v125_v63 }
  0x9a   :  { %v177_v10 = vmul.f32 %v173_v3, %v173_v3 }
  0x9b   :  { %v214_v56 = vpop.f32.mrf.mxu3 }
  0x9c   :  { %v100_v57 = vpop.f32.mrf.mxu0 }
  0x9f   :  { %v127_v58 = vpop.f32.mrf.mxu1 }
  0xa0   :  { %v170_v59 = vpop.f32.mrf.mxu2  ;;  %v128_v62 = vadd.f32 %v127_v58, %v100_v57 }
  0xa2   :  { %v174_v2 = vadd.f32 %v170_v59, %v128_v62 }
  0xa4   :  { %v178_v8 = vmul.f32 %v174_v2, %v174_v2  ;;  %v175_v11 = vadd.f32 %v174_v2, %v173_v3 }
  0xa5   :  { %v217_v60 = vpop.f32.mrf.mxu3 }
  0xa6   :  { %v241_v61 = vpop.f32.mrf.mxu0  ;;  %v179_v15 = vadd.f32 %v178_v8, %v177_v10 }
  0xa7   :  { %v242_v0 = vadd.f32 %v241_v61, %v214_v56 }
  0xa8   :  { %v273_v1 = vpop.f32.mrf.mxu1 }
  0xa9   :  { %v279_v5 = vadd.f32 %v273_v1, %v242_v0 }
  0xab   :  { %v283_v12 = vmul.f32 %v279_v5, %v279_v5 }
  0xac   :  { %v244_v4 = vpop.f32.mrf.mxu2 }
  0xad   :  { %v245_v6 = vadd.f32 %v244_v4, %v217_v60 }
  0xae   :  { %v276_v7 = vpop.f32.mrf.mxu3 }
  0xaf   :  { %v280_v9 = vadd.f32 %v276_v7, %v245_v6 }
  0xb1   :  { %v281_v13 = vadd.f32 %v280_v9, %v279_v5  ;;  %v284_v14 = vmul.f32 %v280_v9, %v280_v9 }
  0xb3   :  { %v282_v16 = vadd.f32 %v281_v13, %v175_v11  ;;  %v285_v17 = vadd.f32 %v284_v14, %v283_v12 }
  0xb5   :  { %v286_v18 = vadd.f32 %v285_v17, %v179_v15  ;;  %289 = vst [vmem:[%s606_s2] sm:$0xff] %v282_v16 }
  0xb7   :  { %292 = vst [vmem:[%s607_s3] sm:$0xff] %v286_v18 }

// kernel: depthwise_separable_conv.3
= control target key start
LH: loop header
LB: loop body
LE: loop exit
PB: predicated region body
PF: predicated region fallthrough
CT: control target
= control target key end

     0   :  { %vm44_vm0 = vcmask 1046528   ;;  %vm115_vm1 = vcmask 1045504   ;;  %vm50_vm2 = vcmask 588800   ;;  %s639_s1 = inlined_call_operand.vmem [shape: f32[3,72,128], index: 1, kind: input, shape index: {}]   ;;  %s640_s0 = inlined_call_operand.vmem [shape: f32[2,18,72], index: 0, kind: input, shape index: {}]   ;;  %s641_s2 = inlined_call_operand.vmem [shape: f32[1,128], index: 2, kind: input, shape index: {}]   ;;  %s642_s3 = inlined_call_operand.vmem [shape: f32[1,128], index: 3, kind: input, shape index: {}]   ;;  %s643_s4 = inlined_call_operand.vmem [shape: f32[2,16,128], index: 4, kind: output, shape index: {}]  }
   0x1   :  { %v312_v0 = vld [vmem:[%s639_s1 + $0x88] sm:$0xff]  ;;  %v408_v1 = vld [vmem:[%s639_s1 + $0xd0] sm:$0xff]  ;;  %v311_v2 = vld [vmem:[%s639_s1 + $0x80] sm:$0xff] }
   0x2   :  { %62 = vmatpush.msra.mxu0 %v312_v0  ;;  %132 = vmatpush.msra.mxu2 %v408_v1  ;;  %v417_v3 = vld [vmem:[%s639_s1 + $0x40] sm:$0xff]  ;;  %v422_v4 = vld [vmem:[%s639_s1 + $0xc8] sm:$0xff]  ;;  %v310_v5 = vld [vmem:[%s639_s1 + $0x78] sm:$0xff] }
   0x3   :  { %89 = vmatpush.msra.mxu1 %v417_v3  ;;  %205 = vmatpush.msra.mxu3 %v312_v0  ;;  %v431_v6 = vld [vmem:[%s639_s1 + $0x38] sm:$0xff]  ;;  %v436_v7 = vld [vmem:[%s639_s1 + $0xc0] sm:$0xff]  ;;  %v442_v8 = vld [vmem:[%s639_s1 + $0x30] sm:$0xff] }
   0x4   :  { %63 = vmatpush.msra.mxu0 %v311_v2  ;;  %133 = vmatpush.msra.mxu2 %v422_v4  ;;  %v309_v9 = vld [vmem:[%s639_s1 + $0x70] sm:$0xff]  ;;  %v451_v10 = vld [vmem:[%s639_s1 + $0xb8] sm:$0xff]  ;;  %v457_v11 = vld [vmem:[%s639_s1 + $0x28] sm:$0xff] }
   0x5   :  { %90 = vmatpush.msra.mxu1 %v431_v6  ;;  %206 = vmatpush.msra.mxu3 %v311_v2  ;;  %v308_v12 = vld [vmem:[%s639_s1 + $0x68] sm:$0xff]  ;;  %v466_v13 = vld [vmem:[%s639_s1 + $0xb0] sm:$0xff]  ;;  %v472_v14 = vld [vmem:[%s639_s1 + $0x20] sm:$0xff] }
   0x6   :  { %64 = vmatpush.msra.mxu0 %v310_v5  ;;  %134 = vmatpush.msra.mxu2 %v436_v7  ;;  %v307_v15 = vld [vmem:[%s639_s1 + $0x60] sm:$0xff]  ;;  %v481_v16 = vld [vmem:[%s639_s1 + $0xa8] sm:$0xff]  ;;  %v487_v17 = vld [vmem:[%s639_s1 + $0x18] sm:$0xff] }
   0x7   :  { %91 = vmatpush.msra.mxu1 %v442_v8  ;;  %207 = vmatpush.msra.mxu3 %v310_v5  ;;  %v19_v18 = vld [vmem:[%s640_s0] sm:$0xff]  ;;  %v495_v19 = vld [vmem:[%s640_s0 + $0x8] sm:$0xff]  ;;  %v306_v20 = vld [vmem:[%s639_s1 + $0x58] sm:$0xff] }
   0x8   :  { %65 = vmatpush.msra.mxu0 %v309_v9  ;;  %135 = vmatpush.msra.mxu2 %v451_v10  ;;  %v504_v21 = vld [vmem:[%s639_s1 + $0xa0] sm:$0xff]  ;;  %v510_v22 = vld [vmem:[%s639_s1 + $0x10] sm:$0xff]  ;;  %v519_v24 = vld [vmem:[%s639_s1 + $0x98] sm:$0xff]  ;;  %v45_v25 = vrot.slane %v19_v18, 1  ;;  %v46_v26 = vrot.slane %v495_v19, 1  ;;  %v116_v28 = vrot.slane %v19_v18, 2 }
   0x9   :  { %92 = vmatpush.msra.mxu1 %v457_v11  ;;  %208 = vmatpush.msra.mxu3 %v309_v9  ;;  %v305_v23 = vld [vmem:[%s639_s1 + $0x50] sm:$0xff]  ;;  %v526_v27 = vld [vmem:[%s639_s1 + $0x8] sm:$0xff]  ;;  %v117_v29 = vrot.slane %v495_v19, 2  ;;  %v532_v30 = vld [vmem:[%s640_s0 + $0x18] sm:$0xff] }
   0xa   :  { %66 = vmatpush.msra.mxu0 %v308_v12  ;;  %136 = vmatpush.msra.mxu2 %v466_v13  ;;  %v537_v31 = vld [vmem:[%s640_s0 + $0x20] sm:$0xff]  ;;  %v304_v32 = vld [vmem:[%s639_s1 + $0x48] sm:$0xff]  ;;  %v546_v33 = vld [vmem:[%s639_s1 + $0x90] sm:$0xff]  ;;  %v47_v34 = vsel %vm44_vm0, %v45_v25, %v46_v26  ;;  %v189_v36 = vrot.slane %v532_v30, 1  ;;  %v257_v48 = vrot.slane %v532_v30, 2 }
   0xb   :  { %93 = vmatpush.msra.mxu1 %v472_v14  ;;  %209 = vmatpush.msra.mxu3 %v308_v12  ;;  %v22_v35 = vld [vmem:[%s639_s1] sm:$0xff]  ;;  %v190_v37 = vrot.slane %v537_v31, 1  ;;  %v118_v38 = vsel %vm115_vm1, %v116_v28, %v117_v29  ;;  %v21_v40 = vld [vmem:[%s640_s0 + $0x10] sm:$0x3]  ;;  %v330_v43 = vld [vmem:[%s640_s0 + $0x28] sm:$0x3] }
   0xc   :  { %67 = vmatpush.msra.mxu0 %v307_v15  ;;  %137 = vmatpush.msra.mxu2 %v481_v16  ;;  %v48_v41 = vrot.slane %v21_v40, 1  ;;  %v119_v42 = vrot.slane %v21_v40, 2  ;;  %v192_v44 = vrot.slane %v330_v43, 1  ;;  %v258_v49 = vrot.slane %v537_v31, 2  ;;  %v375_v56 = vld [vmem:[%s641_s2] ss:$0 sm:$0xff] }
   0xd   :  { %94 = vmatpush.msra.mxu1 %v487_v17  ;;  %210 = vmatpush.msra.mxu3 %v307_v15  ;;  %v191_v39 = vsel %vm44_vm0, %v189_v36, %v190_v37  ;;  %v260_v50 = vrot.slane %v330_v43, 2  ;;  %v376_v59 = vld [vmem:[%s642_s3] ss:$0 sm:$0xff] }
   0xe   :  { %68 = vmatpush.msra.mxu0 %v306_v20  ;;  %138 = vmatpush.msra.mxu2 %v504_v21  ;;  %v49_v45 = vsel %vm44_vm0, %v46_v26, %v48_v41  ;;  %v120_v46 = vsel %vm115_vm1, %v117_v29, %v119_v42  ;;  %v193_v47 = vsel %vm44_vm0, %v190_v37, %v192_v44 }
   0xf   :  { %95 = vmatpush.msra.mxu1 %v510_v22  ;;  %211 = vmatpush.msra.mxu3 %v306_v20  ;;  %v259_v51 = vsel %vm115_vm1, %v257_v48, %v258_v49  ;;  %v261_v52 = vsel %vm115_vm1, %v258_v49, %v260_v50 }
  0x10   :  { %69 = vmatpush.msra.mxu0 %v305_v23  ;;  %139 = vmatpush.msra.mxu2 %v519_v24 }
  0x11   :  { %96 = vmatpush.msra.mxu1 %v526_v27  ;;  %212 = vmatpush.msra.mxu3 %v305_v23 }
  0x12   :  { %70 = vmatpush.msra.mxu0 %v304_v32  ;;  %140 = vmatpush.msra.mxu2 %v546_v33 }
  0x13   :  { %313 = vmatmul.msk.f32.vlgmr.msra.gmra.mxu0 %vm50_vm2, %v47_v34  ;;  %97 = vmatpush.msra.mxu1 %v22_v35 }
  0x14   :  { %232 = vmatpush.msrb.mxu0 %v417_v3  ;;  %357 = vmatpush.msrb.mxu2 %v417_v3 }
  0x15   :  { %326 = vmatmul.msk.f32.vlgmr.msra.gmra.mxu2 %vm50_vm2, %v118_v38  ;;  %213 = vmatpush.msra.mxu3 %v304_v32 }
  0x16   :  { %233 = vmatpush.msrb.mxu0 %v431_v6  ;;  %358 = vmatpush.msrb.mxu2 %v431_v6 }
  0x17   :  { %273 = vmatpush.msrb.mxu1 %v408_v1  ;;  %366 = vmatpush.msrb.mxu3 %v408_v1 }
  0x18   :  { %315 = vmatmul.msk.f32.vlgmr.msra.gmra.mxu1 %vm50_vm2, %v19_v18  ;;  %340 = vmatmul.msk.f32.vlgmr.msra.gmra.mxu3 %vm50_vm2, %v191_v39 }
  0x19   :  { %234 = vmatpush.msrb.mxu0 %v442_v8  ;;  %359 = vmatpush.msrb.mxu2 %v442_v8 }
  0x1a   :  { %274 = vmatpush.msrb.mxu1 %v422_v4  ;;  %367 = vmatpush.msrb.mxu3 %v422_v4 }
  0x1b   :  { %235 = vmatpush.msrb.mxu0 %v457_v11  ;;  %360 = vmatpush.msrb.mxu2 %v457_v11 }
  0x1c   :  { %275 = vmatpush.msrb.mxu1 %v436_v7  ;;  %368 = vmatpush.msrb.mxu3 %v436_v7 }
  0x1d   :  { %236 = vmatpush.msrb.mxu0 %v472_v14  ;;  %361 = vmatpush.msrb.mxu2 %v472_v14 }
  0x1e   :  { %276 = vmatpush.msrb.mxu1 %v451_v10  ;;  %369 = vmatpush.msrb.mxu3 %v451_v10 }
  0x1f   :  { %314 = vmatmul.msk.f32.gmra.mxu0 %vm50_vm2, %v49_v45  ;;  %327 = vmatmul.msk.f32.gmra.mxu2 %vm50_vm2, %v120_v46 }
  0x20   :  { %237 = vmatpush.msrb.mxu0 %v487_v17  ;;  %362 = vmatpush.msrb.mxu2 %v487_v17 }
  0x21   :  { %277 = vmatpush.msrb.mxu1 %v466_v13  ;;  %370 = vmatpush.msrb.mxu3 %v466_v13 }
  0x22   :  { %316 = vmatmul.msk.f32.gmra.mxu1 %vm50_vm2, %v495_v19  ;;  %341 = vmatmul.msk.f32.gmra.mxu3 %vm50_vm2, %v193_v47 }
  0x23   :  { %238 = vmatpush.msrb.mxu0 %v510_v22  ;;  %363 = vmatpush.msrb.mxu2 %v510_v22 }
  0x24   :  { %278 = vmatpush.msrb.mxu1 %v481_v16  ;;  %371 = vmatpush.msrb.mxu3 %v481_v16 }
  0x25   :  { %239 = vmatpush.msrb.mxu0 %v526_v27  ;;  %364 = vmatpush.msrb.mxu2 %v526_v27 }
  0x26   :  { %279 = vmatpush.msrb.mxu1 %v504_v21  ;;  %372 = vmatpush.msrb.mxu3 %v504_v21 }
  0x27   :  { %240 = vmatpush.msrb.mxu0 %v22_v35  ;;  %365 = vmatpush.msrb.mxu2 %v22_v35 }
  0x28   :  { %280 = vmatpush.msrb.mxu1 %v519_v24  ;;  %373 = vmatpush.msrb.mxu3 %v519_v24 }
  0x29   :  { %342 = vmatmul.msk.f32.vlgmr.msrb.gmra.mxu0 %vm50_vm2, %v532_v30  ;;  %343 = vmatmul.msk.f32.vlgmr.msrb.gmra.mxu2 %vm50_vm2, %v537_v31 }
  0x2a   :  { %281 = vmatpush.msrb.mxu1 %v546_v33  ;;  %374 = vmatpush.msrb.mxu3 %v546_v33 }
  0x2b   :  { %353 = vmatmul.msk.f32.vlgmr.msrb.gmra.mxu1 %vm50_vm2, %v259_v51  ;;  %354 = vmatmul.msk.f32.vlgmr.msrb.gmra.mxu3 %vm50_vm2, %v261_v52 }
  0x90   :  { %v72_v53 = vpop.f32.mrf.mxu0 }
  0x95   :  { %v99_v54 = vpop.f32.mrf.mxu1 }
  0x96   :  { %v100_v55 = vadd.f32 %v99_v54, %v72_v53 }
  0x98   :  { %v142_v57 = vpop.f32.mrf.mxu2 }
  0x99   :  { %v148_v58 = vadd.f32 %v142_v57, %v100_v55 }
  0x9b   :  { %v153_v60 = vmul.f32 %v375_v56, %v148_v58  ;;  %v215_v61 = vpop.f32.mrf.mxu3 }
  0x9c   :  { %v75_v62 = vpop.f32.mrf.mxu0 }
  0x9d   :  { %v158_v63 = vadd.f32 %v376_v59, %v153_v60 }
  0x9f   :  { %v160_v0 = vmax.f32 %v158_v63, 0.0  ;;  %v102_v1 = vpop.f32.mrf.mxu1 }
  0xa0   :  { %v103_v2 = vadd.f32 %v102_v1, %v75_v62 }
  0xa1   :  { %162 = vst [vmem:[%s643_s4] sm:$0xff] %v160_v0 }
  0xa2   :  { %v145_v3 = vpop.f32.mrf.mxu2 }
  0xa3   :  { %v149_v4 = vadd.f32 %v145_v3, %v103_v2 }
  0xa5   :  { %v154_v5 = vmul.f32 %v375_v56, %v149_v4  ;;  %v218_v6 = vpop.f32.mrf.mxu3 }
  0xa6   :  { %v242_v7 = vpop.f32.mrf.mxu0 }
  0xa7   :  { %v159_v8 = vadd.f32 %v376_v59, %v154_v5  ;;  %v243_v9 = vadd.f32 %v242_v7, %v215_v61 }
  0xa8   :  { %v283_v10 = vpop.f32.mrf.mxu1 }
  0xa9   :  { %v161_v11 = vmax.f32 %v159_v8, 0.0  ;;  %v289_v12 = vadd.f32 %v283_v10, %v243_v9 }
  0xab   :  { %163 = vst [vmem:[%s643_s4 + $0x8] sm:$0xff] %v161_v11  ;;  %v291_v13 = vmul.f32 %v375_v56, %v289_v12 }
  0xac   :  { %v245_v14 = vpop.f32.mrf.mxu2 }
  0xad   :  { %v293_v15 = vadd.f32 %v376_v59, %v291_v13  ;;  %v246_v16 = vadd.f32 %v245_v14, %v218_v6 }
  0xae   :  { %v286_v17 = vpop.f32.mrf.mxu3 }
  0xaf   :  { %v295_v18 = vmax.f32 %v293_v15, 0.0  ;;  %v290_v19 = vadd.f32 %v286_v17, %v246_v16 }
  0xb1   :  { %355 = vst [vmem:[%s643_s4 + $0x10] sm:$0xff] %v295_v18  ;;  %v292_v20 = vmul.f32 %v375_v56, %v290_v19 }
  0xb3   :  { %v294_v21 = vadd.f32 %v376_v59, %v292_v20 }
  0xb5   :  { %v296_v22 = vmax.f32 %v294_v21, 0.0 }
  0xb7   :  { %356 = vst [vmem:[%s643_s4 + $0x18] sm:$0xff] %v296_v22 }

</bundles_post_ra>
